<compile_context>
chip_gen: v7x
topology: tpu7x:2x2x1
jax: 0.10.0
libtpu: 0.0.40
codegen_flags: <defaults>
</compile_context>

<pallas_src>
import functools

import jax
import jax.numpy as jnp
from jax.experimental import pallas as pl
from jax.experimental.pallas import tpu as pltpu


OUT_PAD = 128  # minimum lane width for an unmasked, lane-dense output store


def _r8(n):
    return -(-n // 8) * 8


def _r128(n):
    return -(-n // 128) * 128


def make_layout(input_dim, hidden_dim, latent_dim, num_layers, out_pad=OUT_PAD):
    """Static row/col layout of every weight inside the single packed slab."""
    width = _r128(max(hidden_dim, 2 * latent_dim, out_pad))
    blocks = {}
    off = 0

    def add(name, rows, cols):
        nonlocal off
        blocks[name] = (off, rows, cols)
        off += _r8(rows)                  # keep every block sublane-aligned

    add("enc_w0", input_dim, hidden_dim)              # group-L1 mask pre-folded
    for i in range(num_layers - 1):
        add(f"enc_wh{i}", hidden_dim, hidden_dim)
    add("enc_wout", hidden_dim, 2 * latent_dim)       # fused mu|logvar head
    add("dec_w0", latent_dim, hidden_dim)
    add("dec_b0", 1, hidden_dim)
    for i in range(num_layers - 1):
        add(f"dec_wh{i}", hidden_dim, hidden_dim)
    add("dec_wout", hidden_dim, out_pad)              # zero-padded to 128 lanes

    return {"blocks": blocks, "rows": off, "width": width,
            "dims": (input_dim, hidden_dim, latent_dim, num_layers, out_pad)}


def pack_params(params, layout, matmul_dtype=jnp.bfloat16):
    """One-time weight prep (call at init, NOT per forward): fold
    relu(group_l1) into enc_w0, pad dec_wout to 128 output lanes, cast to the
    MXU operand dtype, and pack everything into one contiguous slab."""
    blocks = layout["blocks"]
    input_dim, hidden, _latent, _nl, out_pad = layout["dims"]
    slab = jnp.zeros((layout["rows"], layout["width"]), matmul_dtype)

    def put(slab, name, w):
        off, rows, cols = blocks[name]
        return slab.at[off:off + rows, :cols].set(w.astype(matmul_dtype))

    # (x * relu(g)) @ W0  ==  x @ (relu(g)[:, None] * W0)
    g = jnp.maximum(params["group_l1"], 0.0).reshape(input_dim, 1)
    slab = put(slab, "enc_w0", params["enc_w0"] * g)
    for i, w in enumerate(params["enc_wh"]):
        slab = put(slab, f"enc_wh{i}", w)
    slab = put(slab, "enc_wout", params["enc_wout"])
    slab = put(slab, "dec_w0", params["dec_w0"])
    slab = put(slab, "dec_b0", params["dec_b0"].reshape(1, hidden))
    for i, w in enumerate(params["dec_wh"]):
        slab = put(slab, f"dec_wh{i}", w)
    slab = put(slab, "dec_wout",
               jnp.pad(params["dec_wout"], ((0, 0), (0, out_pad - 1))))
    return slab


def _vae_flow_kernel(layout, nsamples, matmul_dtype,
                     slab_ref, x_ref, eps_ref, out_ref):
    """Whole forward pass in one kernel invocation (tiny shapes, no grid)."""
    blocks = layout["blocks"]
    _input_dim, _hidden, latent, num_layers, out_pad = layout["dims"]
    batch = x_ref.shape[0]
    f32 = jnp.float32

    def w(name):
        off, rows, cols = blocks[name]
        return slab_ref[off:off + rows, :cols]   # static, sublane-aligned slice

    def mm(act, weight):
        # Weights already arrive in matmul_dtype; activations are cast only at
        # the MXU input, accumulation stays f32.
        return jnp.dot(act.astype(matmul_dtype), weight,
                       preferred_element_type=f32)

    # ---- encoder (GroupL1MLP): relu(group_l1) mask already folded into W0 ----
    h = jnp.maximum(mm(x_ref[...], w("enc_w0")), 0.0)
    for i in range(num_layers - 1):                  # Linear(bias=False)+ReLU
        h = jnp.maximum(mm(h, w(f"enc_wh{i}")), 0.0)
    enc = mm(h, w("enc_wout"))                       # (B, 2*latent) fused head
    mu, logvar = enc[:, :latent], enc[:, latent:]
    std = jnp.exp(0.5 * logvar)

    # ---- reparameterize ALL samples at once, then ONE decoder pass ----
    eps = eps_ref[...].reshape(nsamples * batch, latent)
    if nsamples > 1:
        mu = jnp.tile(mu, (nsamples, 1))             # (S*B, latent)
        std = jnp.tile(std, (nsamples, 1))
    z = mu + eps * std                               # f32

    d = jnp.maximum(mm(z, w("dec_w0")) + w("dec_b0").astype(f32), 0.0)
    for i in range(num_layers - 1):                  # Linear(bias=False)+ReLU
        d = jnp.maximum(mm(d, w(f"dec_wh{i}")), 0.0)
    # Final layer padded to 128 output lanes -> single unmasked lane-dense store.
    out_ref[...] = mm(d, w("dec_wout")).reshape(nsamples, batch, out_pad)


def vae_flow_forward(slab, x, eps, layout):
    """Per-call hot path: one pallas_call + a column slice of the output."""
    nsamples, batch, latent = eps.shape
    input_dim, hidden, _latent, num_layers, out_pad = layout["dims"]
    f32 = jnp.float32

    flops = 2 * (
        batch * input_dim * hidden
        + (num_layers - 1) * batch * hidden * hidden
        + batch * hidden * 2 * latent
        + nsamples * batch * latent * hidden
        + (num_layers - 1) * nsamples * batch * hidden * hidden
        + nsamples * batch * hidden * out_pad)
    bytes_accessed = (int(slab.size) * slab.dtype.itemsize
                      + int(x.size) * 4 + int(eps.size) * 4
                      + nsamples * batch * out_pad * 4)

    kernel = functools.partial(_vae_flow_kernel, layout, nsamples, slab.dtype)
    out = pl.pallas_call(
        kernel,
        out_shape=jax.ShapeDtypeStruct((nsamples, batch, out_pad), f32),
        in_specs=[pl.BlockSpec(memory_space=pltpu.MemorySpace.VMEM)] * 3,
        out_specs=pl.BlockSpec(memory_space=pltpu.MemorySpace.VMEM),
        cost_estimate=pl.CostEstimate(
            flops=flops,
            transcendentals=batch * latent,
            bytes_accessed=bytes_accessed),
    )(slab, x.astype(f32), eps.astype(f32))
    return out[..., :1]                              # (nsamples, batch, 1)


def vae_flow_reference(params, x, eps):
    """Pure-JAX f32 reference mirroring the PyTorch semantics."""
    g = jnp.maximum(params["group_l1"], 0.0)
    h = jnp.maximum((x * g) @ params["enc_w0"], 0.0)
    for w in params["enc_wh"]:
        h = jnp.maximum(h @ w, 0.0)
    enc = h @ params["enc_wout"]
    latent = enc.shape[1] // 2
    mu, logvar = enc[:, :latent], enc[:, latent:]
    std = jnp.exp(0.5 * logvar)
    z = mu[None] + eps * std[None]                   # (S, B, latent)
    d = jnp.maximum(z @ params["dec_w0"] + params["dec_b0"], 0.0)
    for w in params["dec_wh"]:
        d = jnp.maximum(d @ w, 0.0)
    return d @ params["dec_wout"]                    # (S, B, 1)


def init_params(key, input_dim, hidden_dim, latent_dim, num_layers):
    ks = jax.random.split(key, 8)
    scale = 0.2
    enc_wh = tuple(
        scale * jax.random.normal(k, (hidden_dim, hidden_dim), jnp.float32)
        for k in jax.random.split(ks[2], num_layers - 1))
    dec_wh = tuple(
        scale * jax.random.normal(k, (hidden_dim, hidden_dim), jnp.float32)
        for k in jax.random.split(ks[6], num_layers - 1))
    return {
        # group_l1 is ones in the torch init; use a random vector (with
        # negatives) to actually exercise the relu mask, kept as (1, D_in).
        "group_l1": jax.random.normal(ks[0], (1, input_dim), jnp.float32),
        "enc_w0": scale * jax.random.normal(ks[1], (input_dim, hidden_dim), jnp.float32),
        "enc_wh": enc_wh,
        "enc_wout": scale * jax.random.normal(ks[3], (hidden_dim, 2 * latent_dim), jnp.float32),
        "dec_w0": scale * jax.random.normal(ks[4], (latent_dim, hidden_dim), jnp.float32),
        "dec_b0": scale * jax.random.normal(ks[5], (1, hidden_dim), jnp.float32),
        "dec_wh": dec_wh,
        "dec_wout": scale * jax.random.normal(ks[7], (hidden_dim, 1), jnp.float32),
    }


if __name__ == "__main__":
    input_dim, hidden_dim, latent_dim, num_layers = 16, 32, 8, 2
    batch, nsamples = 8, 2

    key = jax.random.PRNGKey(0)
    k_param, k_x, k_eps = jax.random.split(key, 3)

    params = init_params(k_param, input_dim, hidden_dim, latent_dim, num_layers)
    x = jax.random.normal(k_x, (batch, input_dim), jnp.float32)
    # TODO(synk): torch.randn inside forward() has no in-kernel equivalent that
    # reproduces torch's RNG stream; eps is supplied by the caller instead.
    eps = jax.random.normal(k_eps, (nsamples, batch, latent_dim), jnp.float32)

    ref = vae_flow_reference(params, x, eps)
    layout = make_layout(input_dim, hidden_dim, latent_dim, num_layers)

    # Exact-f32 MXU-operand path: bit-faithful check vs the f32 reference.
    slab_f32 = pack_params(params, layout, matmul_dtype=jnp.float32)
    out_f32 = jax.block_until_ready(vae_flow_forward(slab_f32, x, eps, layout))
    assert out_f32.shape == (nsamples, batch, 1)
    assert jnp.allclose(out_f32, ref, atol=1e-5, rtol=1e-5), "f32 mismatch vs reference"

    # Default path: bf16 MXU operands (native on v5e/v6e/v7x), f32 accumulation
    # and f32 elementwise math.
    slab_bf16 = pack_params(params, layout)          # bf16 by default
    out_bf16 = jax.block_until_ready(vae_flow_forward(slab_bf16, x, eps, layout))
    assert out_bf16.shape == (nsamples, batch, 1)
    assert jnp.allclose(out_bf16, ref, atol=1e-1, rtol=1e-1), "bf16 mismatch vs reference"

    print("KERNEL_OK")
</pallas_src>

<mosaic_0001>
module attributes {stable_mosaic.version = 11 : i64} {
  func.func @_vae_flow_kernel(%arg0: memref<160x128xf32, #tpu.memory_space<vmem>>, %arg1: memref<8x16xf32, #tpu.memory_space<vmem>>, %arg2: memref<2x8x8xf32, #tpu.memory_space<vmem>>, %arg3: memref<2x8x128xf32, #tpu.memory_space<vmem>>) attributes {dimension_semantics = [], scalar_prefetch = 0 : i64, scratch_operands = 0 : i64, tpu.core_type = #tpu.core_type<tc>} {
    %c0 = arith.constant 0 : index
    %c0_0 = arith.constant 0 : index
    %0 = vector.load %arg1[%c0, %c0_0] : memref<8x16xf32, #tpu.memory_space<vmem>>, vector<8x16xf32>
    %c0_1 = arith.constant 0 : index
    %c0_2 = arith.constant 0 : index
    %1 = vector.load %arg0[%c0_1, %c0_2] : memref<160x128xf32, #tpu.memory_space<vmem>>, vector<16x32xf32>
    %cst = arith.constant dense<0.000000e+00> : vector<8x32xf32>
    %2 = tpu.matmul %0, %1, %cst {dimension_numbers = #tpu.dot_dimension_numbers<[1], [0], [0], [1], [0, 0, 1, 1], [], []>} : vector<8x16xf32>, vector<16x32xf32>, vector<8x32xf32> -> vector<8x32xf32>
    %cst_3 = arith.constant 0.000000e+00 : f32
    %3 = vector.broadcast %cst_3 : f32 to vector<8x32xf32>
    %4 = arith.maximumf %2, %3 : vector<8x32xf32>
    %c16 = arith.constant 16 : index
    %c0_4 = arith.constant 0 : index
    %5 = vector.load %arg0[%c16, %c0_4] : memref<160x128xf32, #tpu.memory_space<vmem>>, vector<32x32xf32>
    %cst_5 = arith.constant dense<0.000000e+00> : vector<8x32xf32>
    %6 = tpu.matmul %4, %5, %cst_5 {dimension_numbers = #tpu.dot_dimension_numbers<[1], [0], [0], [1], [0, 0, 1, 1], [], []>} : vector<8x32xf32>, vector<32x32xf32>, vector<8x32xf32> -> vector<8x32xf32>
    %cst_6 = arith.constant 0.000000e+00 : f32
    %7 = vector.broadcast %cst_6 : f32 to vector<8x32xf32>
    %8 = arith.maximumf %6, %7 : vector<8x32xf32>
    %c48 = arith.constant 48 : index
    %c0_7 = arith.constant 0 : index
    %9 = vector.load %arg0[%c48, %c0_7] : memref<160x128xf32, #tpu.memory_space<vmem>>, vector<32x16xf32>
    %cst_8 = arith.constant dense<0.000000e+00> : vector<8x16xf32>
    %10 = tpu.matmul %8, %9, %cst_8 {dimension_numbers = #tpu.dot_dimension_numbers<[1], [0], [0], [1], [0, 0, 1, 1], [], []>} : vector<8x32xf32>, vector<32x16xf32>, vector<8x16xf32> -> vector<8x16xf32>
    %11 = vector.extract_strided_slice %10 {offsets = [0, 0], sizes = [8, 8], strides = [1, 1]} : vector<8x16xf32> to vector<8x8xf32>
    %12 = vector.extract_strided_slice %10 {offsets = [0, 8], sizes = [8, 8], strides = [1, 1]} : vector<8x16xf32> to vector<8x8xf32>
    %cst_9 = arith.constant 5.000000e-01 : f32
    %13 = vector.broadcast %cst_9 : f32 to vector<8x8xf32>
    %14 = arith.mulf %13, %12 : vector<8x8xf32>
    %15 = math.exp %14 : vector<8x8xf32>
    %c0_10 = arith.constant 0 : index
    %c0_11 = arith.constant 0 : index
    %c0_12 = arith.constant 0 : index
    %16 = vector.load %arg2[%c0_10, %c0_11, %c0_12] : memref<2x8x8xf32, #tpu.memory_space<vmem>>, vector<2x8x8xf32>
    %17 = vector.shape_cast %16 : vector<2x8x8xf32> to vector<16x8xf32>
    %18 = tpu.concatenate %11, %11 in 0 : vector<8x8xf32>, vector<8x8xf32> -> vector<16x8xf32>
    %19 = tpu.concatenate %15, %15 in 0 : vector<8x8xf32>, vector<8x8xf32> -> vector<16x8xf32>
    %20 = arith.mulf %17, %19 : vector<16x8xf32>
    %21 = arith.addf %18, %20 : vector<16x8xf32>
    %c80 = arith.constant 80 : index
    %c0_13 = arith.constant 0 : index
    %22 = vector.load %arg0[%c80, %c0_13] : memref<160x128xf32, #tpu.memory_space<vmem>>, vector<8x32xf32>
    %cst_14 = arith.constant dense<0.000000e+00> : vector<16x32xf32>
    %23 = tpu.matmul %21, %22, %cst_14 {dimension_numbers = #tpu.dot_dimension_numbers<[1], [0], [0], [1], [0, 0, 1, 1], [], []>} : vector<16x8xf32>, vector<8x32xf32>, vector<16x32xf32> -> vector<16x32xf32>
    %c88 = arith.constant 88 : index
    %c0_15 = arith.constant 0 : index
    %24 = vector.load %arg0[%c88, %c0_15] : memref<160x128xf32, #tpu.memory_space<vmem>>, vector<1x32xf32>
    %25 = vector.broadcast %24 : vector<1x32xf32> to vector<16x32xf32>
    %26 = arith.addf %23, %25 : vector<16x32xf32>
    %cst_16 = arith.constant 0.000000e+00 : f32
    %27 = vector.broadcast %cst_16 : f32 to vector<16x32xf32>
    %28 = arith.maximumf %26, %27 : vector<16x32xf32>
    %c96 = arith.constant 96 : index
    %c0_17 = arith.constant 0 : index
    %29 = vector.load %arg0[%c96, %c0_17] : memref<160x128xf32, #tpu.memory_space<vmem>>, vector<32x32xf32>
    %cst_18 = arith.constant dense<0.000000e+00> : vector<16x32xf32>
    %30 = tpu.matmul %28, %29, %cst_18 {dimension_numbers = #tpu.dot_dimension_numbers<[1], [0], [0], [1], [0, 0, 1, 1], [], []>} : vector<16x32xf32>, vector<32x32xf32>, vector<16x32xf32> -> vector<16x32xf32>
    %cst_19 = arith.constant 0.000000e+00 : f32
    %31 = vector.broadcast %cst_19 : f32 to vector<16x32xf32>
    %32 = arith.maximumf %30, %31 : vector<16x32xf32>
    %c128 = arith.constant 128 : index
    %c0_20 = arith.constant 0 : index
    %33 = vector.load %arg0[%c128, %c0_20] : memref<160x128xf32, #tpu.memory_space<vmem>>, vector<32x128xf32>
    %cst_21 = arith.constant dense<0.000000e+00> : vector<16x128xf32>
    %34 = tpu.matmul %32, %33, %cst_21 {dimension_numbers = #tpu.dot_dimension_numbers<[1], [0], [0], [1], [0, 0, 1, 1], [], []>} : vector<16x32xf32>, vector<32x128xf32>, vector<16x128xf32> -> vector<16x128xf32>
    %35 = vector.shape_cast %34 : vector<16x128xf32> to vector<2x8x128xf32>
    %c0_22 = arith.constant 0 : index
    %c0_23 = arith.constant 0 : index
    %c0_24 = arith.constant 0 : index
    %36 = vector.load %arg3[%c0_22, %c0_23, %c0_24] : memref<2x8x128xf32, #tpu.memory_space<vmem>>, vector<2x8x128xf32>
    tpu.vector_store %arg3[%c0_22, %c0_23, %c0_24], %35 {strides = array<i32>} : memref<2x8x128xf32, #tpu.memory_space<vmem>>, vector<2x8x128xf32>,
    return
  }
}

</mosaic_0001>

<bundles_post_ra>
// kernel: tpu_custom_call.1
= control target key start
LH: loop header
LB: loop body
LE: loop exit
PB: predicated region body
PF: predicated region fallthrough
CT: control target
= control target key end

     0   :  { %8 = vsyncpa [#allocation3], 0  ;;  %s917_s0 = inlined_call_operand.hbm [shape: f32[160,128], index: 0, kind: input, shape index: {}]   ;;  %s918_s1 = inlined_call_operand.hbm [shape: f32[8,16], index: 1, kind: input, shape index: {}]   ;;  %s919_s2 = inlined_call_operand.hbm [shape: f32[2,8,8], index: 2, kind: input, shape index: {}]   ;;  %s920_s3 = inlined_call_operand.hbm [shape: f32[2,8,128], index: 3, kind: output, shape index: {}]  }
   0x1   :  { %9 = vsyncpa [#allocation6], 0 }
   0x2   :  { %10 = vsyncpa [#allocation4], 0  ;;  %s814_s12 = smov [#allocation5]   ;;  %s815_s14 = smov [#allocation2]  }
   0x3   :  { %s29_s13 = sshll.u32 %s814_s12, 4  ;;  %s16_s15 = sshll.u32 %s815_s14, 4  ;;  %s30_s13 = int_to_ptr.vmem [resolvable:$true] %s29_s13  ;;  %s844_s15 = int_to_ptr.vmem [resolvable:$true] %s16_s15 }
   0x4   :  { %s720_s18 = scalar_lea.hbm %s918_s1, 128 }
   0x5   :  { %p721_p0 = scmp.ne.s32.totalorder %s918_s1, %s720_s18  ;;  %p724_p1 = scmp.lt.u32.totalorder %s720_s18, %s918_s1 }
   0x7   :  { %p726_p2 = pnand %p724_p1, %p721_p0 }
   0x9   :  { %729 = shalt.err (!%p726_p2)
}
   0xa   :  { %s730_s23 = scalar_lea.vmem %s30_s13, 128  ;;  %p735_p4 = scmp.lt.s32.totalorder %s30_s13, %s30_s13 }
   0xb   :  { %p731_p3 = scmp.ne.s32.totalorder %s30_s13, %s730_s23  ;;  %p736_p5 = scmp.lt.s32.totalorder %s730_s23, %s730_s23 }
   0xd   :  { %p737_p6 = por %p736_p5, %p735_p4 }
   0xf   :  { %p738_p7 = pnand %p737_p6, %p731_p3 }
  0x11   :  { %741 = shalt.err (!%p738_p7)
}
  0x12   :  { %32 = dma.hbm_to_vmem [thread:$0]  %s918_s1, 128, %s30_s13, [#allocation6]  }
  0x13   :  { %s742_s28 = scalar_lea.hbm %s917_s0, 2560 }
  0x14   :  { %p743_p8 = scmp.ne.s32.totalorder %s917_s0, %s742_s28  ;;  %p746_p9 = scmp.lt.u32.totalorder %s742_s28, %s917_s0 }
  0x16   :  { %p748_p10 = pnand %p746_p9, %p743_p8 }
  0x18   :  { %751 = shalt.err (!%p748_p10)
}
  0x19   :  { %s752_s6 = scalar_lea.vmem %s844_s15, 2560  ;;  %p757_p12 = scmp.lt.s32.totalorder %s844_s15, %s844_s15 }
  0x1a   :  { %p753_p11 = scmp.ne.s32.totalorder %s844_s15, %s752_s6  ;;  %p758_p13 = scmp.lt.s32.totalorder %s752_s6, %s752_s6 }
  0x1c   :  { %p759_p0 = por %p758_p13, %p757_p12 }
  0x1e   :  { %p760_p1 = pnand %p759_p0, %p753_p11 }
  0x20   :  { %763 = shalt.err (!%p760_p1)
}
  0x21   :  { %s816_s1 = smov 128   ;;  %s817_s7 = smov 8  }
  0x22   :  { %22 = dma.hbm_to_vmem [thread:$0]  %s917_s0, 2560, %s844_s15, [#allocation3], %s816_s1, %s816_s1, %s817_s7  }
  0x23   :  { %s818_s10 = smov [#allocation7]   ;;  %s764_s14 = scalar_lea.hbm %s919_s2, 256 }
  0x24   :  { %s38_s11 = sshll.u32 %s818_s10, 4  ;;  %p765_p2 = scmp.ne.s32.totalorder %s919_s2, %s764_s14  ;;  %s39_s11 = int_to_ptr.vmem [resolvable:$true] %s38_s11 }
  0x25   :  { %p768_p3 = scmp.lt.u32.totalorder %s764_s14, %s919_s2 }
  0x27   :  { %p770_p4 = pnand %p768_p3, %p765_p2 }
  0x29   :  { %773 = shalt.err (!%p770_p4)
}
  0x2a   :  { %s774_s20 = scalar_lea.vmem %s39_s11, 256  ;;  %p779_p6 = scmp.lt.s32.totalorder %s39_s11, %s39_s11 }
  0x2b   :  { %p775_p5 = scmp.ne.s32.totalorder %s39_s11, %s774_s20  ;;  %p780_p7 = scmp.lt.s32.totalorder %s774_s20, %s774_s20 }
  0x2d   :  { %p781_p8 = por %p780_p7, %p779_p6 }
  0x2f   :  { %p782_p9 = pnand %p781_p8, %p775_p5 }
  0x31   :  { %785 = shalt.err (!%p782_p9)
}
  0x32   :  { %44 = dma.hbm_to_vmem [thread:$0]  %s919_s2, 256, %s39_s11, [#allocation6], %s816_s1, %s816_s1, %s817_s7  }
  0x33   :  { %808 = dma.done.wait [#allocation3], 2560  }
  0x34   :  { %809 = vsyncadd [#allocation3], 4294964736 }
  0x35   :  { %810 = dma.done.wait [#allocation6], 384  }
  0x36   :  { %811 = vsyncadd [#allocation6], 4294966912  ;;  %v819_v0 = vmov 0.0|0.0   ;;  %vm820_vm0 = vmmov 0   ;;  %v821_v1 = vmov 0.0   ;;  %v55_v2 = vld [vmem:[#allocation2] sm:$0xff] }
  0x37   :  { %677 = vmatprep.subr.bf16.mxu0 %v819_v0  ;;  %625 = vmatprep.mubr.msk.f32.mxu0 %vm820_vm0, %v821_v1  ;;  %v56_v3 = vld [vmem:[#allocation2 + $0x8] sm:$0xff]  ;;  %v132_v5 = vld [vmem:[#allocation2 + $0x10] sm:$0xff]  ;;  %v133_v6 = vld [vmem:[#allocation2 + $0x18] sm:$0xff]  ;;  %vm57_vm1 = vcmask 130048   ;;  %vm136_vm2 = vcmask 261120   ;;  %s822_s2 = smov 120  }
  0x38   :  { %680 = vmatprep.subr.bf16.mxu1 %v819_v0  ;;  %636 = vmatprep.mubr.msk.f32.mxu1 %vm820_vm0, %v821_v1  ;;  %v678_v4 = vpack.c.bf16 %v56_v3, %v55_v2  ;;  %v681_v7 = vpack.c.bf16 %v133_v6, %v132_v5  ;;  %v54_v8 = vld [vmem:[#allocation5] sm:$0xff]  ;;  %v135_v10 = vld [vmem:[#allocation2 + $0x28] sm:$0xff]  ;;  %v211_v12 = vld [vmem:[#allocation2 + $0x30] sm:$0xff]  ;;  %vm307_vm3 = vcmask 64512   ;;  %s823_s21 = smov [#allocation8]  }
  0x39   :  { %v134_v9 = vld [vmem:[#allocation2 + $0x20] sm:$0xff]  ;;  %v212_v13 = vld [vmem:[#allocation2 + $0x38] sm:$0xff]  ;;  %v214_v19 = vld [vmem:[#allocation2 + $0x48] sm:$0xff]  ;;  %s570_s22 = sshll.u32 %s823_s21, 4  ;;  %s571_s22 = int_to_ptr.vmem [resolvable:$true] %s570_s22 }
  0x3a   :  { %679 = vmatpush3.bf16.msra.mxu0 %v678_v4  ;;  %682 = vmatpush3.bf16.msra.mxu1 %v681_v7  ;;  %v684_v11 = vpack.c.bf16 %v135_v10, %v134_v9  ;;  %v687_v14 = vpack.c.bf16 %v212_v13, %v211_v12  ;;  %v213_v18 = vld [vmem:[#allocation2 + $0x40] sm:$0xff]  ;;  %v301_v28 = vld [vmem:[#allocation2 + $0x50] sm:$0xff]  ;;  %v392_v30 = vld [vmem:[#allocation2 + $0x68] sm:$0xff]  ;;  %s786_s23 = scalar_lea.vmem %s571_s22, 256  ;;  %p791_p11 = scmp.lt.s32.totalorder %s571_s22, %s571_s22 }
  0x3b   :  { %686 = vmatprep.subr.bf16.mxu0 %v819_v0  ;;  %683 = vmatprep.subr.bf16.mxu1 %v819_v0  ;;  %v690_v20 = vpack.c.bf16 %v214_v19, %v213_v18  ;;  %v391_v29 = vld [vmem:[#allocation2 + $0x60] sm:$0xff]  ;;  %v291_v33 = vld [vmem:[#allocation7] sm:$0xff]  ;;  %v292_v34 = vld [vmem:[#allocation7 + $0x8] sm:$0xff]  ;;  %p787_p10 = scmp.ne.s32.totalorder %s571_s22, %s786_s23  ;;  %p792_p12 = scmp.lt.s32.totalorder %s786_s23, %s786_s23 }
  0x3c   :  { %v692_v31 = vpack.c.bf16 %v392_v30, %v391_v29  ;;  %v393_v40 = vld [vmem:[#allocation2 + $0x70] sm:$0xff]  ;;  %v394_v41 = vld [vmem:[#allocation2 + $0x78] sm:$0xff]  ;;  %v478_v43 = vld [vmem:[#allocation2 + $0x80] sm:$0xff] }
  0x3d   :  { %626 = vmatmul.mubr.msk.f32.vlgmr.msra.gmra.mrb[0].mxu0 %vm57_vm1, %v54_v8  ;;  %v696_v42 = vpack.c.bf16 %v394_v41, %v393_v40  ;;  %v479_v44 = vld [vmem:[#allocation2 + $0x88] sm:$0xff]  ;;  %v586_v46 = vld [vmem:[#allocation2 + $0x58] ss:$0 sm:$0xff]  ;;  %v480_v53 = vld [vmem:[#allocation2 + $0x90] sm:$0xff]  ;;  %p793_p13 = por %p792_p12, %p791_p11 }
  0x3e   :  { %647 = vmatprep.mubr.msk.f32.mxu0 %vm820_vm0, %v821_v1  ;;  %685 = vmatpush3.bf16.msra.mxu1 %v684_v11  ;;  %v700_v45 = vpack.c.bf16 %v479_v44, %v478_v43  ;;  %v481_v54 = vld [vmem:[#allocation2 + $0x98] sm:$0xff] }
  0x3f   :  { %688 = vmatpush3.bf16.msra.mxu0 %v687_v14  ;;  %650 = vmatprep.subr.mxu1 %v301_v28  ;;  %v704_v55 = vpack.c.bf16 %v481_v54, %v480_v53  ;;  %p794_p0 = pnand %p793_p13, %p787_p10 }
  0x40   :  { %689 = vmatprep.subr.bf16.mxu0 %v819_v0 }
  0x43   :  { %691 = vmatpush3.bf16.msra.mxu0 %v690_v20 }
  0x44   :  { %693 = vmatprep.subr.bf16.mxu0 %v692_v31 }
 0x110   :  { %v127_v15 = vpop.f32.mrb[0].mxu0 }
 0x111   :  { %v131_v16 = vmax.f32 %v127_v15, 0.0  ;;  %v627_v17 = vpop.f32.mrb[1].mxu0 }
 0x113   :  { %637 = vmatmul.mubr.msk.f32.vlgmr.msra.gmra.mrb[0].mxu1 %vm136_vm2, %v131_v16 }
 0x114   :  { %651 = vmatpush3.msra.mxu1 %v301_v28 }
 0x115   :  { %701 = vmatprep.subr.bf16.mxu1 %v700_v45 }
 0x1e6   :  { %v206_v21 = vpop.f32.mrb[0].mxu1 }
 0x1e7   :  { %v210_v22 = vmax.f32 %v206_v21, 0.0  ;;  %v638_v23 = vpop.f32.mrb[1].mxu1 }
 0x1e9   :  { %648 = vmatmul.mubr.msk.f32.vlgmr.msra.gmra.mrb[2].mxu0 %vm136_vm2, %v210_v22 }
 0x1ea   :  { %695 = vmatpush3.bf16.msra.mxu0 %v692_v31 }
 0x1eb   :  { %697 = vmatprep.subr.bf16.mxu0 %v696_v42 }
 0x1ee   :  { %699 = vmatpush3.bf16.msra.mxu0 %v696_v42 }
 0x2bc   :  { %v284_v24 = vpop.f32.mrb[2].mxu0 }
 0x2bd   :  { %v288_v25 = vmul.f32 0.5, %v284_v24  ;;  %v649_v26 = vpop.f32.mrb[3].mxu0 }
 0x2bf   :  { %v289_v27 = vmul.f32 1.442695, %v288_v25 }
 0x2c1   :  { %718 = vpow2.f32 %v289_v27 }
 0x2cb   :  { %v719_v32 = vpop.eup %718 }
 0x2cc   :  { %294 = vrot.lane.b32.xlu0 %v719_v32, %s822_s2 }
 0x33e   :  { %v295_v35 = vpop.permute.xlu0 %294 }
 0x33f   :  { %v297_v36 = vmul.f32 %v295_v35, %v291_v33  ;;  %v298_v37 = vmul.f32 %v295_v35, %v292_v34 }
 0x341   :  { %v299_v38 = vadd.f32 %v297_v36, %v284_v24  ;;  %v300_v39 = vadd.f32 %v298_v37, %v284_v24 }
 0x343   :  { %652 = vmatprep.mubr.msk.f32.mxu1 %vm307_vm3, %v299_v38 }
 0x344   :  { %653 = vmatmul.mubr.msk.f32.vlgmr.msra.gmra.mrb[2].mxu1 %vm307_vm3, %v300_v39 }
 0x345   :  { %703 = vmatpush3.bf16.msra.mxu1 %v700_v45 }
 0x346   :  { %705 = vmatprep.subr.bf16.mxu1 %v704_v55 }
 0x349   :  { %707 = vmatpush3.bf16.msra.mxu1 %v704_v55 }
 0x417   :  { %v654_v47 = vpop.f32.mrb[2].mxu1 }
 0x418   :  { %v386_v48 = vadd.f32 %v654_v47, %v586_v46  ;;  %v380_v49 = vpop.f32.mrb[3].mxu1 }
 0x419   :  { %v381_v50 = vadd.f32 %v586_v46, %v380_v49 }
 0x41a   :  { %v390_v52 = vmax.f32 %v386_v48, 0.0 }
 0x41b   :  { %v389_v51 = vmax.f32 %v381_v50, 0.0 }
 0x41d   :  { %663 = vmatprep.mubr.msk.f32.mxu0 %vm136_vm2, %v389_v51 }
 0x41e   :  { %664 = vmatmul.mubr.msk.f32.vlgmr.msra.gmra.mrb[4].mxu0 %vm136_vm2, %v390_v52 }
 0x4f1   :  { %v665_v56 = vpop.f32.mrb[4].mxu0 }
 0x4f2   :  { %v467_v57 = vpop.f32.mrb[5].mxu0  ;;  %v477_v59 = vmax.f32 %v665_v56, 0.0 }
 0x4f3   :  { %v476_v58 = vmax.f32 %v467_v57, 0.0 }
 0x4f5   :  { %674 = vmatprep.mubr.msk.f32.mxu1 %vm136_vm2, %v476_v58 }
 0x4f6   :  { %675 = vmatmul.mubr.msk.f32.vlgmr.msra.gmra.mrb[4].mxu1 %vm136_vm2, %v477_v59 }
 0x5c9   :  { %v676_v60 = vpop.f32.mrb[4].mxu1 }
 0x5ca   :  { %564 = vst [vmem:[#allocation8 + $0x8] sm:$0xff] %v676_v60  ;;  %v554_v61 = vpop.f32.mrb[5].mxu1 }
 0x5cb   :  { %563 = vst [vmem:[#allocation8] sm:$0xff] %v554_v61 }
 0x5cc   :  { %797 = shalt.err (!%p794_p0)
}
 0x5cd   :  { %s798_s26 = scalar_lea.hbm %s920_s3, 256 }
 0x5ce   :  { %p799_p1 = scmp.ne.s32.totalorder %s920_s3, %s798_s26  ;;  %p802_p2 = scmp.lt.u32.totalorder %s798_s26, %s920_s3 }
 0x5d0   :  { %p804_p3 = pnand %p802_p2, %p799_p1 }
 0x5d2   :  { %807 = shalt.err (!%p804_p3)
}
 0x5d3   :  { %576 = dma.vmem_to_hbm [thread:$0]  %s571_s22, 256, %s920_s3, [#allocation4], %s816_s1, %s816_s1, %s817_s7  }
 0x5d4   :  { %812 = dma.done.wait [#allocation4], 256  }
 0x5d5   :  { %813 = vsyncadd [#allocation4], 4294967040 }
 0x5d6   :  { %580 = vsyncpa [#allocation3], 1 }
 0x5d7   :  { %581 = vsyncpa [#allocation6], 1 }
 0x5d8   :  { %582 = vsyncpa [#allocation4], 1 }

</bundles_post_ra>
